<compile_context>
chip_gen: v5e
topology: v5e:2x2
jax: 0.10.0
libtpu: 0.0.40
codegen_flags: <defaults>
</compile_context>

<pallas_src>
import math

import jax
import jax.numpy as jnp
from jax.experimental import pallas as pl
from jax.experimental.pallas import tpu as pltpu


def _embed_kernel(dir_ref, x_ref, w_ref, b_ref, o_ref):
    # dir_ref: (1, T, 3) f32 | x_ref: (1, s_tile, T, P) | w_ref: (3P, D) bf16/f32
    # b_ref : (1, D) f32     | o_ref: (1, s_tile*T, D)
    _, St, T, P = x_ref.shape

    x = x_ref[0]                          # (St, T, P)
    d = dir_ref[0]                        # (T, 3) f32
    d0 = d[:, 0:1][None]                  # (1, T, 1)  cos(year)
    d1 = d[:, 1:2][None]                  # (1, T, 1)  sin(year)*cos(day)
    d2 = d[:, 2:3][None]                  # (1, T, 1)  cos(year)*sin(day)

    # Fuse the per-direction scaling into the matmul input so the whole embedding is
    # ONE (rows, 3P) @ (3P, D) MXU matmul with f32 accumulation.
    # (d-major concat matches torch's flatten(-2,-1) of '...tdp'.)
    xs = jnp.concatenate([x * d0, x * d1, x * d2], axis=-1)     # (St, T, 3P) f32
    xs2 = xs.reshape(St * T, 3 * P).astype(w_ref.dtype)         # leading-dim collapse

    out = jnp.dot(xs2, w_ref[...], preferred_element_type=jnp.float32)   # (rows, D) f32
    # TODO(synk): dropout(p=0.1) is identity here (eval mode); training-mode RNG masking not implemented.
    o_ref[0] = (out + b_ref[...]).astype(o_ref.dtype)           # lane-dense full-width store


def _direction_from_timestamp(ts):
    """(B, T, K) -> (B, T, 3) f32 direction tensor (tiny; done once wrapper-side)."""
    tsp = ts.astype(jnp.float32) * jnp.float32(math.pi)
    if tsp.shape[-1] == 4:                       # torch: x_timestamp[..., [0, -1]]
        year, day = tsp[..., 0], tsp[..., 3]
    else:
        year, day = tsp[..., 0], tsp[..., 1]
    return jnp.stack([jnp.cos(year),
                      jnp.sin(year) * jnp.cos(day),
                      jnp.cos(year) * jnp.sin(day)], axis=-1)


def _pick_s_tile(S, T, target_rows=1024):
    """Largest divisor s of S with s*T <= target_rows and s*T % 8 == 0; else full S."""
    for s in range(S, 0, -1):
        if S % s == 0 and s * T <= target_rows and (s * T) % 8 == 0:
            return s
    return S                                     # full-extent block is always legal


def data_embedding_spacetime_combine(x, x_timestamp, weight, bias, *,
                                     mxu_dtype=jnp.bfloat16,
                                     out_dtype=jnp.float32,
                                     target_rows_per_tile=1024,
                                     vmem_limit_bytes=None):
    """x: (B,S,T,P); x_timestamp: (B,T,K); weight: (3P,D); bias: (D,).
    Returns (B, S, T, D) in out_dtype (f32 default; pass bf16 to halve store traffic)."""
    B, S, T, P = x.shape
    D = weight.shape[-1]
    assert weight.shape[0] == 3 * P, "weight must be (3*c_in, d_model)"

    dirs = _direction_from_timestamp(x_timestamp)        # (B, T, 3) f32
    w = weight.astype(mxu_dtype)                         # only the MXU operand is narrowed
    b2 = bias.reshape(1, D).astype(jnp.float32)          # bias add stays f32

    # Row tile sized from the OUTPUT block; 512-2048 rows hits ~85% of HBM roofline while
    # keeping double-buffered tiles well inside v5e's 16 MiB scoped / v7x's 64 MiB VMEM.
    s_tile = _pick_s_tile(S, T, target_rows_per_tile)
    rows_tile = s_tile * T
    n_s = S // s_tile

    out3d = pl.pallas_call(
        _embed_kernel,
        out_shape=jax.ShapeDtypeStruct((B, S * T, D), out_dtype),
        grid=(B, n_s),
        in_specs=[
            pl.BlockSpec((1, T, 3), lambda b, s: (b, 0, 0)),          # direction (per batch)
            pl.BlockSpec((1, s_tile, T, P), lambda b, s: (b, s, 0, 0)),
            pl.BlockSpec((3 * P, D), lambda b, s: (0, 0)),            # weight: VMEM-resident
            pl.BlockSpec((1, D), lambda b, s: (0, 0)),                # bias:   VMEM-resident
        ],
        out_specs=pl.BlockSpec((1, rows_tile, D), lambda b, s: (b, s, 0)),
        compiler_params=pltpu.CompilerParams(
            dimension_semantics=("parallel", "parallel"),             # feeds both v7x TCs
            vmem_limit_bytes=vmem_limit_bytes),
    )(dirs, x, w, b2)

    return out3d.reshape(B, S, T, D)                     # free row-major view back to torch layout


def _reference(x, ts, W, b):
    # Pure-JAX reimplementation of the torch forward (eval mode), f32.
    tsp = ts * jnp.pi
    if tsp.shape[-1] == 4:
        tsp = tsp[..., jnp.array([0, 3])]
    year, day = tsp[..., 0], tsp[..., 1]
    xdir = jnp.stack([jnp.cos(year),
                      jnp.sin(year) * jnp.cos(day),
                      jnp.cos(year) * jnp.sin(day)], 1)              # (B, 3, T)
    xe = jnp.einsum("bstp,bdt->bstdp", x, xdir)
    xe = xe.reshape(*xe.shape[:-2], -1)                              # d-major flatten -> 3P
    return xe @ W + b


if __name__ == "__main__":
    # batch, space_num, seq_len, c_in, d_model, time-features (freq='h')
    B, S, T, P, D, K = 2, 4, 8, 4, 128, 4

    key = jax.random.PRNGKey(0)
    kx, kt, kw, kb = jax.random.split(key, 4)
    x = jax.random.normal(kx, (B, S, T, P), dtype=jnp.float32)
    x_timestamp = jax.random.uniform(kt, (B, T, K), dtype=jnp.float32,
                                     minval=-0.5, maxval=0.5)
    weight = jax.random.normal(kw, (3 * P, D), dtype=jnp.float32) / jnp.sqrt(3.0 * P)
    bias = jax.random.normal(kb, (D,), dtype=jnp.float32) * 0.01

    ref = _reference(x, x_timestamp, weight, bias)

    # Exact-semantics check (f32 MXU operands, f32 output).
    out_f32 = jax.block_until_ready(
        data_embedding_spacetime_combine(x, x_timestamp, weight, bias,
                                         mxu_dtype=jnp.float32))
    assert out_f32.shape == (B, S, T, D)
    assert jnp.allclose(out_f32, ref, rtol=1e-5, atol=1e-5), (
        f"f32 max abs err {jnp.max(jnp.abs(out_f32 - ref))}")

    # Default perf path (bf16 MXU operands, f32 accumulation + f32 output).
    out = jax.block_until_ready(
        data_embedding_spacetime_combine(x, x_timestamp, weight, bias))
    assert out.shape == (B, S, T, D)
    assert jnp.allclose(out, ref, rtol=5e-2, atol=5e-2), (
        f"bf16-mxu max abs err {jnp.max(jnp.abs(out - ref))}")

    # Optional bf16 output stream (halves the dominant HBM store traffic).
    out_bf16 = jax.block_until_ready(
        data_embedding_spacetime_combine(x, x_timestamp, weight, bias,
                                         out_dtype=jnp.bfloat16))
    assert out_bf16.dtype == jnp.bfloat16
    assert jnp.allclose(out_bf16.astype(jnp.float32), ref, rtol=5e-2, atol=5e-2), (
        f"bf16-out max abs err {jnp.max(jnp.abs(out_bf16.astype(jnp.float32) - ref))}")

    print("KERNEL_OK")
</pallas_src>

<mosaic_0001>
module attributes {stable_mosaic.version = 11 : i64} {
  func.func @_embed_kernel(%arg0: i32, %arg1: i32, %arg2: memref<1x8x3xf32, #tpu.memory_space<vmem>>, %arg3: memref<1x4x8x4xf32, #tpu.memory_space<vmem>>, %arg4: memref<12x128xf32, #tpu.memory_space<vmem>>, %arg5: memref<1x128xf32, #tpu.memory_space<vmem>>, %arg6: memref<1x32x128xf32, #tpu.memory_space<vmem>>) attributes {dimension_semantics = [#tpu.dimension_semantics<parallel>, #tpu.dimension_semantics<parallel>], iteration_bounds = array<i64: 2, 1>, scalar_prefetch = 0 : i64, scratch_operands = 0 : i64, tpu.core_type = #tpu.core_type<tc>, window_params = [{transform_indices = @transform_0, window_bounds = array<i64: 1, 8, 3>}, {transform_indices = @transform_1, window_bounds = array<i64: 1, 4, 8, 4>}, {pipeline_mode = #tpu.pipeline_mode<synchronous>, transform_indices = @transform_2, window_bounds = array<i64: 12, 128>}, {pipeline_mode = #tpu.pipeline_mode<synchronous>, transform_indices = @transform_3, window_bounds = array<i64: 1, 128>}, {transform_indices = @transform_4, window_bounds = array<i64: 1, 32, 128>}]} {
    %c0 = arith.constant 0 : index
    %c0_0 = arith.constant 0 : index
    %c0_1 = arith.constant 0 : index
    %c0_2 = arith.constant 0 : index
    %0 = vector.load %arg3[%c0, %c0_0, %c0_1, %c0_2] : memref<1x4x8x4xf32, #tpu.memory_space<vmem>>, vector<1x4x8x4xf32>
    %1 = vector.shape_cast %0 : vector<1x4x8x4xf32> to vector<4x8x4xf32>
    %c0_3 = arith.constant 0 : index
    %c0_4 = arith.constant 0 : index
    %c0_5 = arith.constant 0 : index
    %2 = vector.load %arg2[%c0_3, %c0_4, %c0_5] : memref<1x8x3xf32, #tpu.memory_space<vmem>>, vector<1x8x3xf32>
    %3 = vector.shape_cast %2 : vector<1x8x3xf32> to vector<8x3xf32>
    %4 = vector.extract_strided_slice %3 {offsets = [0, 0], sizes = [8, 1], strides = [1, 1]} : vector<8x3xf32> to vector<8x1xf32>
    %5 = vector.shape_cast %4 : vector<8x1xf32> to vector<1x8x1xf32>
    %6 = vector.extract_strided_slice %3 {offsets = [0, 1], sizes = [8, 1], strides = [1, 1]} : vector<8x3xf32> to vector<8x1xf32>
    %7 = vector.shape_cast %6 : vector<8x1xf32> to vector<1x8x1xf32>
    %8 = vector.extract_strided_slice %3 {offsets = [0, 2], sizes = [8, 1], strides = [1, 1]} : vector<8x3xf32> to vector<8x1xf32>
    %9 = vector.shape_cast %8 : vector<8x1xf32> to vector<1x8x1xf32>
    %10 = vector.broadcast %5 : vector<1x8x1xf32> to vector<4x8x4xf32>
    %11 = arith.mulf %1, %10 : vector<4x8x4xf32>
    %12 = vector.broadcast %7 : vector<1x8x1xf32> to vector<4x8x4xf32>
    %13 = arith.mulf %1, %12 : vector<4x8x4xf32>
    %14 = vector.broadcast %9 : vector<1x8x1xf32> to vector<4x8x4xf32>
    %15 = arith.mulf %1, %14 : vector<4x8x4xf32>
    %16 = tpu.concatenate %11, %13, %15 in 2 : vector<4x8x4xf32>, vector<4x8x4xf32>, vector<4x8x4xf32> -> vector<4x8x12xf32>
    %17 = vector.shape_cast %16 : vector<4x8x12xf32> to vector<32x12xf32>
    %c0_6 = arith.constant 0 : index
    %c0_7 = arith.constant 0 : index
    %18 = vector.load %arg4[%c0_6, %c0_7] : memref<12x128xf32, #tpu.memory_space<vmem>>, vector<12x128xf32>
    %cst = arith.constant dense<0.000000e+00> : vector<32x128xf32>
    %19 = tpu.matmul %17, %18, %cst {dimension_numbers = #tpu.dot_dimension_numbers<[1], [0], [0], [1], [0, 0, 1, 1], [], []>} : vector<32x12xf32>, vector<12x128xf32>, vector<32x128xf32> -> vector<32x128xf32>
    %c0_8 = arith.constant 0 : index
    %c0_9 = arith.constant 0 : index
    %20 = vector.load %arg5[%c0_8, %c0_9] : memref<1x128xf32, #tpu.memory_space<vmem>>, vector<1x128xf32>
    %21 = vector.broadcast %20 : vector<1x128xf32> to vector<32x128xf32>
    %22 = arith.addf %19, %21 : vector<32x128xf32>
    %c0_10 = arith.constant 0 : index
    %c0_11 = arith.constant 0 : index
    %c0_12 = arith.constant 0 : index
    %23 = vector.load %arg6[%c0_10, %c0_11, %c0_12] : memref<1x32x128xf32, #tpu.memory_space<vmem>>, vector<1x32x128xf32>
    %24 = vector.shape_cast %23 : vector<1x32x128xf32> to vector<32x128xf32>
    %25 = vector.shape_cast %22 : vector<32x128xf32> to vector<1x32x128xf32>
    tpu.vector_store %arg6[%c0_10, %c0_11, %c0_12], %25 {strides = array<i32>} : memref<1x32x128xf32, #tpu.memory_space<vmem>>, vector<1x32x128xf32>,
    return
  }
  func.func @transform_0(%arg0: i32, %arg1: i32) -> (i32, i32, i32) {
    %c0_i32 = arith.constant 0 : i32
    %c0_i32_0 = arith.constant 0 : i32
    %c0_i32_1 = arith.constant 0 : i32
    return %arg0, %c0_i32, %c0_i32_0 : i32, i32, i32
  }
  func.func @transform_1(%arg0: i32, %arg1: i32) -> (i32, i32, i32, i32) {
    %c0_i32 = arith.constant 0 : i32
    %c0_i32_0 = arith.constant 0 : i32
    %c0_i32_1 = arith.constant 0 : i32
    return %arg0, %arg1, %c0_i32, %c0_i32_0 : i32, i32, i32, i32
  }
  func.func @transform_2(%arg0: i32, %arg1: i32) -> (i32, i32) {
    %c0_i32 = arith.constant 0 : i32
    %c0_i32_0 = arith.constant 0 : i32
    %c0_i32_1 = arith.constant 0 : i32
    return %c0_i32, %c0_i32_0 : i32, i32
  }
  func.func @transform_3(%arg0: i32, %arg1: i32) -> (i32, i32) {
    %c0_i32 = arith.constant 0 : i32
    %c0_i32_0 = arith.constant 0 : i32
    %c0_i32_1 = arith.constant 0 : i32
    return %c0_i32, %c0_i32_0 : i32, i32
  }
  func.func @transform_4(%arg0: i32, %arg1: i32) -> (i32, i32, i32) {
    %c0_i32 = arith.constant 0 : i32
    %c0_i32_0 = arith.constant 0 : i32
    return %arg0, %arg1, %c0_i32 : i32, i32, i32
  }
}

</mosaic_0001>

<bundles_post_ra>
// kernel: tpu_custom_call.1
= control target key start
LH: loop header
LB: loop body
LE: loop exit
PB: predicated region body
PF: predicated region fallthrough
CT: control target
= control target key end

     0   :  { %9 = vsyncpa [#allocation3], 0  ;;  %s810_s0 = inlined_call_operand.vmem [shape: f32[2,8,3], index: 0, kind: input, shape index: {}]   ;;  %s811_s1 = inlined_call_operand.vmem [shape: f32[2,4,8,4], index: 1, kind: input, shape index: {}]   ;;  %s812_s2 = inlined_call_operand.vmem [shape: f32[12,128], index: 2, kind: input, shape index: {}]   ;;  %s813_s3 = inlined_call_operand.vmem [shape: f32[1,128], index: 3, kind: input, shape index: {}]   ;;  %s814_s4 = inlined_call_operand.hbm [shape: f32[2,32,128], index: 4, kind: output, shape index: {}]  }
   0x1   :  { %11 = vsyncpa [#allocation3 + $0x1], 0  ;;  %s684_s15 = smov 0   ;;  %s686_s16 = smov 0  }
   0x2   :  { %s688_s17 = smov 0   ;;  %s690_s18 = smov 0  }
   0x3   :  { %s692_s19 = smov 0   ;;  %s694_s20 = smov 0  }
   0x4 LB: > { %s481_s21 = sadd.s32 4294967295, %s651_s20   ;;  %s482_s22 = sadd.s32 4294967294, %s651_s20   ;;  %s651_s20 = sphi %s694_s20, %s17_s20   ;;  %s647_s19 = sphi %s692_s19, %s821_s19   ;;  %s643_s18 = sphi %s690_s18, %s820_s18   ;;  %s639_s17 = sphi %s688_s17, %s819_s17   ;;  %s635_s16 = sphi %s686_s16, %s818_s16   ;;  %s631_s15 = sphi %s684_s15, %s817_s15  }
   0x5   : > { %s29_s23 = sadd.s32 1, %s647_s19  ;;  %s134_s24 = sadd.s32 1, %s639_s17 }
   0x6   : > { %p31_p0 = scmp.ge.s32.totalorder %s29_s23, 2  ;;  %p144_p1 = scmp.ne.s32.totalorder %s639_s17, %s635_s16 }
   0x7   : > { %p145_p2 = scmp.eq.s32.totalorder %s481_s21, 1  ;;  %p150_p3 = scmp.ne.s32.totalorder %s635_s16, %s631_s15 }
   0x8   : > { %s823_s23 = smov (%p31_p0, %s29_s23), 0  ;;  %p151_p5 = scmp.eq.s32.totalorder %s482_s22, 1 }
   0x9   : > { %p724_p4 = por %p145_p2, %p144_p1  ;;  %s129_s26 = ssub.s32 %s647_s19, %s823_s23 }
   0xa   : > { %p485_p6 = scmp.ge.s32.totalorder %s651_s20, 1  ;;  %p132_p7 = scmp.eq.s32.totalorder %s129_s26, 0 }
   0xb   : > { %p731_p8 = por %p151_p5, %p150_p3  ;;  %p195_p9 = scmp.lt.s32.totalorder %s651_s20, 3 }
   0xc   : > { %s737_s28 = scalar_select %p132_p7, %s639_s17, %s134_s24  }
   0xd   : > { %p196_p10 = pnand %p485_p6, %p195_p9 }
   0xe   : > { %p229_p11 = scmp.lt.s32.totalorder (!%p196_p10), %s643_s18, 1  ;;  %s656_s12 = smov (!%p196_p10), 4  }
   0xf   : > { %199 = sbr.rel (%p196_p10) target bundleno = 407 (0x197), region = 36  ;;  %s657_s13 = smov (!%p196_p10), 8  }
  0x10   : > { %s226_s26 = sand.u32 (!%p196_p10), 1, %s635_s16  }
  0x11   : > { %s373_s14 = scalar_lea.sflag (!%p196_p10), [#allocation3], %s226_s26 }
  0x14   : > { %v653_v0 = vmov 1   ;;  %v654_v1 = vmov 0   ;;  %s230_s29 = scalar_select %p229_p11, %s643_s18, 1  ;;  %v655_v3 = vmov 2   ;;  %v317_v18 = vld [vmem:[%s812_s2 + $0x8] sm:$0xf] }
  0x15   : > { %569 = vset.pattern.permute.xlu0 %v653_v0  ;;  %571 = vset.pattern.permute.xlu1 %v654_v1  ;;  %vm335_vm0 = vcmask 1043456   ;;  %v316_v19 = vld [vmem:[%s812_s2] sm:$0xff]  ;;  %vm311_vm1 = vcmask 64512   ;;  %vm306_vm2 = vcmask 31744   ;;  %vm322_vm3 = vcmask 97280  }
  0x16   : > { %s487_s30 = sshll.u32 %s230_s29, 3  ;;  %s500_s8 = sshll.u32 %s230_s29, 5  ;;  %502 = vmatpush.msk.msra.mxu1 %vm335_vm0, %v317_v18  ;;  %503 = vmatpush.msk.msra.mxu2 %vm335_vm0, %v317_v18  ;;  %v572_v41 = vld [vmem:[%s813_s3] ss:$0 sm:$0xff] }
  0x17   : > { %s232_s7 = scalar_lea.vmem %s810_s0, %s487_s30  ;;  %s241_s11 = scalar_lea.vmem %s811_s1, %s500_s8  ;;  %504 = vmatpush.msk.msra.mxu3 %vm335_vm0, %v317_v18  ;;  %490 = vmatpush.msk.msra.mxu0 %vm335_vm0, %v317_v18 }
  0x18   : > { %v248_v2 = vld [vmem:[%s232_s7] sm:$0xff]  ;;  %v247_v4 = vld [vmem:[%s241_s11 + $0x18] sm:$0xff]  ;;  %v246_v5 = vld [vmem:[%s241_s11 + $0x10] sm:$0xff]  ;;  %505 = vmatpush.msra.mxu1 %v316_v19  ;;  %506 = vmatpush.msra.mxu2 %v316_v19  ;;  %s486_s29 = sshll.u32 %s226_s26, 5  ;;  %s501_s7 = sshll.u32 %s643_s18, 5 }
  0x19   : > { %259 = vperm.xlu0 %569, %v248_v2   ;;  %251 = vperm.xlu1 %571, %v248_v2   ;;  %v245_v6 = vld [vmem:[%s241_s11 + $0x8] sm:$0xff]  ;;  %v244_v14 = vld [vmem:[%s241_s11] sm:$0xff]  ;;  %s228_s6 = scalar_lea.vmem [#allocation2], %s486_s29  ;;  %s386_s10 = scalar_lea.hbm %s814_s4, %s501_s7 }
  0x1a   : > { %507 = vmatpush.msra.mxu3 %v316_v19  ;;  %354 = vmatpush.msra.mxu0 %v316_v19  ;;  %s387_s11 = sshll.u32 %s228_s6, 4  ;;  %s593_s29 = scalar_lea.hbm %s814_s4, 64  ;;  %s388_s11 = int_to_ptr.vmem [resolvable:$true] %s387_s11 }
  0x21   : > { %570 = vset.pattern.permute.xlu0 %v655_v3 }
  0x22   : > { %267 = vperm.xlu0 %570, %v248_v2  }
  0x8b   : > { %v260_v7 = vpop.permute.xlu0 %259  ;;  %v252_v22 = vpop.permute.xlu1 %251 }
  0x8c   : > { %v265_v8 = vmul.f32 %v260_v7, %v247_v4  ;;  %v264_v9 = vmul.f32 %v260_v7, %v246_v5  ;;  %v263_v10 = vmul.f32 %v260_v7, %v245_v6  ;;  %v262_v15 = vmul.f32 %v260_v7, %v244_v14 }
  0x8d   : > { %v256_v24 = vmul.f32 %v252_v22, %v246_v5  ;;  %v255_v25 = vmul.f32 %v252_v22, %v245_v6  ;;  %v257_v33 = vmul.f32 %v252_v22, %v247_v4  ;;  %v254_v37 = vmul.f32 %v252_v22, %v244_v14 }
  0x8e   : > { %284 = vrot.lane.b32.xlu2 %v265_v8, %s656_s12  ;;  %282 = vrot.lane.b32.xlu1 %v264_v9, %s656_s12 }
  0x8f   : > { %280 = vrot.lane.b32.xlu0 %v263_v10, %s656_s12 }
  0x94   : > { %v268_v11 = vpop.permute.xlu0 %267 }
  0x95   : > { %v273_v12 = vmul.f32 %v268_v11, %v247_v4  ;;  %v272_v13 = vmul.f32 %v268_v11, %v246_v5  ;;  %v270_v16 = vmul.f32 %v268_v11, %v244_v14  ;;  %v271_v17 = vmul.f32 %v268_v11, %v245_v6 }
  0x97   : > { %300 = vrot.lane.b32.xlu1 %v273_v12, %s657_s13  ;;  %298 = vrot.lane.b32.xlu2 %v272_v13, %s657_s13 }
  0x9f   : > { %278 = vrot.lane.b32.xlu2 %v262_v15, %s656_s12  ;;  %294 = vrot.lane.b32.xlu1 %v270_v16, %s657_s13  ;;  %s389_s12 = sshll.u32 %s386_s10, 4  ;;  %s390_s12 = int_to_ptr.hbm [resolvable:$true] %s389_s12 }
  0xa0   : > { %s587_s21 = sshra.s32 %s390_s12, 4  ;;  %s588_s21 = int_to_ptr.hbm [resolvable:$true] %s587_s21 }
  0xa1   : > { %s589_s18 = scalar_lea.hbm %s588_s21, 32  ;;  %p594_p1 = scmp.lt.s32.totalorder %s588_s21, %s814_s4 }
  0xa2   : > { %p590_p12 = scmp.ne.s32.totalorder %s588_s21, %s589_s18  ;;  %p595_p2 = scmp.lt.s32.totalorder %s593_s29, %s589_s18 }
  0xa4   : > { %p591_p13 = pnand %p590_p12, %p724_p4  ;;  %p596_p3 = por %p595_p2, %p594_p1 }
  0xa6   : > { %p592_p0 = pneg %p591_p13 }
  0xa7   : > { %296 = vrot.lane.b32.xlu2 %v271_v17, %s657_s13 }
  0xa8   : > { %p597_p5 = pnand %p596_p3, %p592_p0 }
  0xe8   : > { %v285_v20 = vpop.permute.xlu2 %284 }
  0xe9   : > { %v310_v34 = vsel %vm306_vm2, %v257_v33, %v285_v20 }
  0xf1   : > { %v299_v21 = vpop.permute.xlu2 %298 }
  0xf9   : > { %v279_v23 = vpop.permute.xlu2 %278 }
  0xfa   : > { %v307_v38 = vsel %vm306_vm2, %v254_v37, %v279_v23 }
 0x100   : > { %v283_v26 = vpop.permute.xlu1 %282 }
 0x101   : > { %v309_v27 = vsel %vm306_vm2, %v256_v24, %v283_v26  ;;  %v281_v28 = vpop.permute.xlu0 %280  ;;  %v297_v29 = vpop.permute.xlu2 %296 }
 0x102   : > { %v308_v30 = vsel %vm306_vm2, %v255_v25, %v281_v28  ;;  %v314_v31 = vsel %vm311_vm1, %v309_v27, %v299_v21 }
 0x103   : > { %v313_v32 = vsel %vm311_vm1, %v308_v30, %v297_v29  ;;  %493 = vmatmul.msk.f32.vlgmr.msra.gmra.mxu2 %vm322_vm3, %v314_v31 }
 0x104   : > { %492 = vmatmul.msk.f32.vlgmr.msra.gmra.mxu1 %vm322_vm3, %v313_v32 }
 0x109   : > { %v301_v35 = vpop.permute.xlu1 %300 }
 0x10a   : > { %v315_v36 = vsel %vm311_vm1, %v310_v34, %v301_v35 }
 0x10b   : > { %494 = vmatmul.msk.f32.vlgmr.msra.gmra.mxu3 %vm322_vm3, %v315_v36 }
 0x111   : > { %v295_v39 = vpop.permute.xlu1 %294 }
 0x112   : > { %v312_v40 = vsel %vm311_vm1, %v307_v38, %v295_v39 }
 0x113   : > { %491 = vmatmul.msk.f32.vlgmr.msra.gmra.mxu0 %vm322_vm3, %v312_v40 }
 0x181   : > { %v359_v42 = vpop.f32.mrf.mxu1 }
 0x182   : > { %v360_v43 = vadd.f32 %v572_v41, %v359_v42 }
 0x184   : > { %369 = vst [vmem:[%s228_s6 + $0x8] sm:$0xff] %v360_v43 }
 0x186   : > { %v362_v44 = vpop.f32.mrf.mxu2 }
 0x187   : > { %v363_v45 = vadd.f32 %v572_v41, %v362_v44 }
 0x189   : > { %370 = vst [vmem:[%s228_s6 + $0x10] sm:$0xff] %v363_v45 }
 0x18e   : > { %v365_v46 = vpop.f32.mrf.mxu3 }
 0x18f   : > { %v366_v47 = vadd.f32 %v572_v41, %v365_v46 }
 0x190   : > { %v356_v48 = vpop.f32.mrf.mxu0 }
 0x191   : > { %371 = vst [vmem:[%s228_s6 + $0x18] sm:$0xff] %v366_v47  ;;  %v357_v49 = vadd.f32 %v572_v41, %v356_v48 }
 0x193   : > { %368 = vst [vmem:[%s228_s6] sm:$0xff] %v357_v49 }
 0x194   : > { %600 = shalt.err (!%p597_p5)
}
 0x195   : > { %s658_s26 = smov 128  }
 0x196   : > { %508 = dma.vmem_to_hbm [thread:$0]  (%p724_p4), %s388_s11, 512, %s390_s12, %s373_s14, %s658_s26, %s658_s26, %s657_s13  }
 0x197 PF: > { %p514_p6 = scmp.ge.s32.totalorder %s651_s20, 2  ;;  %s404_s6 = sand.u32 1, %s631_s15  }
 0x198   : > { %s405_s7 = scalar_lea.sflag [#allocation3], %s404_s6 }
 0x199   : > { %p511_p7 = pnand %p514_p6, %p731_p8 }
 0x19b   : > { %p512_p9 = pneg %p511_p7 }
 0x19d   : > { %626 = dma.done.wait (%p512_p9), %s405_s7, 512  }
 0x19e   : > { %628 = vsyncadd (%p512_p9), %s405_s7, 4294966784  ;;  %s17_s20 = sadd.s32 1, %s651_s20   ;;  %s817_s15 = smov %s635_s16 }
 0x19f   : > { %p14_p10 = scmp.ge.s32.totalorder %s17_s20, 4   ;;  %s818_s16 = smov %s639_s17 }
 0x1a0   : > { %s819_s17 = smov %s737_s28  ;;  %s820_s18 = smov %s647_s19 }
 0x1a1   : > { %s821_s19 = smov %s823_s23  ;;  %16 = sbr.rel (!%p14_p10) target bundleno = 4 (0x4), region = 74 }
 0x1a6   :  { %411 = vsyncpa [#allocation3], 1 }
 0x1a7   :  { %413 = vsyncpa [#allocation3 + $0x1], 1 }

</bundles_post_ra>
